<compile_context>
chip_gen: v7x
topology: tpu7x:2x2x1
jax: 0.10.0
libtpu: 0.0.40
codegen_flags: <defaults>
</compile_context>

<pallas_src>
import functools

import jax
import jax.numpy as jnp
from jax.experimental import pallas as pl
from jax.experimental.pallas import tpu as pltpu


def _gelu_tanh(x):
    # TODO(synk): PyTorch nn.GELU() defaults to the exact erf formulation; the
    # tanh approximation (max abs deviation ~3e-3) is used because erf has no
    # guaranteed Mosaic lowering.  The reference below uses the same formula.
    c = 0.7978845608028654  # sqrt(2/pi)
    return 0.5 * x * (1.0 + jnp.tanh(c * (x + 0.044715 * (x * x * x))))


def _tab_kernel(x_ref, w1_ref, b1_ref, w2_ref, b2_ref, o_ref,
                xpad_ref, rhs_ref, *, ksize, dilation, pad_left, t_valid):
    # x_ref   : (bblk, C, T)                  input block (T padded to x128)
    # w*_ref  : (C, K*C) bf16                 BN-folded conv LHS (taps stacked)
    # b*_ref  : (C, 1)  f32                   BN-folded per-channel bias
    # o_ref   : (bblk, 2C, T)                 output ([:, :C] gated, [:, C:] residual)
    # xpad_ref: (C, bblk*(T+pad)) bf16        zero-halo padded activations, batch on lanes
    # rhs_ref : (K*C, bblk*(T+pad)-pad) bf16  K dilated taps stacked on sublane axis
    bblk, C, T = x_ref.shape
    pad_total = dilation * (ksize - 1)
    Tp = T + pad_total
    n_cols = bblk * Tp - pad_total
    Tv = t_valid

    # ---- init padded scratch: zero the halos only, write activations (bf16) ----
    for b in range(bblk):
        col0 = b * Tp
        cs = col0 + pad_left
        if pad_left > 0:
            xpad_ref[:, col0:cs] = jnp.zeros((C, pad_left), xpad_ref.dtype)
        tail = Tp - pad_left - Tv
        if tail > 0:
            xpad_ref[:, cs + Tv:col0 + Tp] = jnp.zeros((C, tail), xpad_ref.dtype)
        xpad_ref[:, cs:cs + Tv] = x_ref[b, :, :Tv].astype(xpad_ref.dtype)

    def conv_stage(w_ref, b_ref):
        # Dilated 'same' conv over all bblk rows as ONE MXU matmul: stack the K
        # shifted views along the contraction dim, then (C, K*C) @ (K*C, n_cols)
        # with an f32 accumulator.
        for k in range(ksize):
            off = k * dilation
            rhs_ref[k * C:(k + 1) * C, :] = xpad_ref[:, off:off + n_cols]
        y = jnp.dot(w_ref[...], rhs_ref[...],
                    preferred_element_type=jnp.float32)
        return y + b_ref[...]                 # broadcast per-channel BN bias (f32)

    # conv1 + BN1 + GELU   (Dropout2d is identity at inference)
    h = _gelu_tanh(conv_stage(w1_ref, b1_ref))
    for b in range(bblk):
        cs = b * Tp + pad_left
        xpad_ref[:, cs:cs + Tv] = h[:, b * Tp:b * Tp + Tv].astype(xpad_ref.dtype)

    # conv2 + BN2 + GELU + sigmoid gate
    g = jax.nn.sigmoid(_gelu_tanh(conv_stage(w2_ref, b2_ref)))

    for b in range(bblk):
        xb = x_ref[b]
        gb = g[:, b * Tp:b * Tp + T]
        o_ref[b, :C, :] = (xb.astype(jnp.float32) * gb).astype(o_ref.dtype)
        o_ref[b, C:, :] = xb                  # concat([F_x, original_x], dim=1)


def temporal_aware_block(x, conv1_w, bn1, conv2_w, bn2,
                         *, dilation=1, eps=1e-5, b_block=8):
    """x: (B, C, T); conv*_w: (C, C, K) (PyTorch OIK layout);
    bn* = (gamma, beta, running_mean, running_var), each (C,). Returns (B, 2C, T)."""
    B, C, T0 = x.shape
    C_out, C_in, K = conv1_w.shape
    assert C_out == C and C_in == C and conv2_w.shape == (C, C, K)

    pad_total = dilation * (K - 1)
    pad_left = pad_total // 2                 # PyTorch padding='same' convention

    # Pad T to a multiple of 128 so output stores are lane-dense / unmasked.
    # Padded tail columns are zero inputs -> zero outputs, sliced off below.
    T = ((T0 + 127) // 128) * 128
    x_t = x if T == T0 else jnp.pad(x, ((0, 0), (0, 0), (0, T - T0)))

    def fold_bn(w, bn):
        gamma, beta, mean, var = bn
        scale = gamma / jnp.sqrt(var + eps)
        w_eff = w * scale[:, None, None]
        # (C_out, K*C_in) bf16: tap-major along the contraction dim -> MXU LHS.
        w_kc = jnp.transpose(w_eff, (0, 2, 1)).reshape(C, K * C).astype(jnp.bfloat16)
        b_eff = (beta - mean * scale).astype(jnp.float32).reshape(C, 1)
        return w_kc, b_eff

    w1_kc, b1 = fold_bn(conv1_w, bn1)
    w2_kc, b2 = fold_bn(conv2_w, bn2)

    # ---- batch blocking -----------------------------------------------------
    # >= 2 grid steps whenever B >= 2 (v7x has 2 TensorCores; also lets the
    # BlockSpec pipeline overlap DMA with compute), and keep the double-buffered
    # in/out blocks + scratches under the 16 MiB scoped-VMEM default (v5e).
    Tp = T + pad_total
    itemsize = x.dtype.itemsize
    per_row = 2 * (C * T + 2 * C * T) * itemsize       # x + out blocks, double-buffered
    per_row += (C * Tp + K * C * Tp) * 2               # bf16 xpad + stacked-taps scratch
    per_row += 3 * C * Tp * 4                          # f32 intermediates (y/h/g)
    budget = 12 * 1024 * 1024
    bblk = min(b_block, pl.cdiv(B, 2) if B >= 2 else 1, budget // max(per_row, 1))
    bblk = int(max(1, bblk))

    b_pad = pl.cdiv(B, bblk) * bblk
    x_in = x_t if b_pad == B else jnp.pad(x_t, ((0, b_pad - B), (0, 0), (0, 0)))

    kernel = functools.partial(_tab_kernel, ksize=K, dilation=dilation,
                               pad_left=pad_left, t_valid=T0)
    n_cols = bblk * Tp - pad_total

    out = pl.pallas_call(
        kernel,
        out_shape=jax.ShapeDtypeStruct((b_pad, 2 * C, T), x.dtype),
        grid_spec=pltpu.PrefetchScalarGridSpec(
            num_scalar_prefetch=0,
            grid=(b_pad // bblk,),
            in_specs=[
                pl.BlockSpec((bblk, C, T), lambda i: (i, 0, 0)),   # x block
                pl.BlockSpec((C, K * C), lambda i: (0, 0)),        # w1 (BN-folded, bf16)
                pl.BlockSpec((C, 1), lambda i: (0, 0)),            # b1 (BN-folded)
                pl.BlockSpec((C, K * C), lambda i: (0, 0)),        # w2 (BN-folded, bf16)
                pl.BlockSpec((C, 1), lambda i: (0, 0)),            # b2 (BN-folded)
            ],
            out_specs=pl.BlockSpec((bblk, 2 * C, T), lambda i: (i, 0, 0)),
            scratch_shapes=[
                pltpu.VMEM((C, bblk * Tp), jnp.bfloat16),          # padded activations
                pltpu.VMEM((K * C, n_cols), jnp.bfloat16),         # stacked dilated taps
            ],
        ),
        compiler_params=pltpu.CompilerParams(
            dimension_semantics=("parallel",),
        ),
    )(x_in, w1_kc, b1, w2_kc, b2)

    if b_pad != B:
        out = out[:B]
    if T != T0:
        out = out[:, :, :T0]
    return out


def _reference(x, w1, bn1, w2, bn2, *, dilation=1, eps=1e-5):
    """Plain-JAX reference mirroring the PyTorch forward (eval mode)."""
    def stage(h, w, bn):
        gamma, beta, mean, var = bn
        C_out, C_in, K = w.shape
        T = h.shape[-1]
        tot = dilation * (K - 1)
        lp = tot // 2
        hp = jnp.pad(h, ((0, 0), (0, 0), (lp, tot - lp)))
        y = sum(jnp.einsum('oi,bit->bot', w[:, :, k],
                           hp[:, :, k * dilation:k * dilation + T])
                for k in range(K))
        y = (y - mean[None, :, None]) * (gamma / jnp.sqrt(var + eps))[None, :, None]
        y = y + beta[None, :, None]
        return _gelu_tanh(y)

    h = stage(x, w1, bn1)
    g = jax.nn.sigmoid(stage(h, w2, bn2))
    return jnp.concatenate([x * g, x], axis=1)


if __name__ == "__main__":
    B, C, T = 2, 32, 128          # batch, nb_filters, sequence length
    K, dilation = 3, 1            # kernel_size, dilation_rate

    key = jax.random.PRNGKey(0)
    kx, kw1, kw2, kg1, kb1, km1, kv1, kg2, kb2, km2, kv2 = jax.random.split(key, 11)

    x = jax.random.normal(kx, (B, C, T), dtype=jnp.float32)
    wscale = 1.0 / (C * K) ** 0.5
    conv1_w = jax.random.normal(kw1, (C, C, K), dtype=jnp.float32) * wscale
    conv2_w = jax.random.normal(kw2, (C, C, K), dtype=jnp.float32) * wscale

    bn1 = (jax.random.uniform(kg1, (C,), minval=0.5, maxval=1.5),
           0.1 * jax.random.normal(kb1, (C,)),
           0.1 * jax.random.normal(km1, (C,)),
           jax.random.uniform(kv1, (C,), minval=0.5, maxval=1.5))
    bn2 = (jax.random.uniform(kg2, (C,), minval=0.5, maxval=1.5),
           0.1 * jax.random.normal(kb2, (C,)),
           0.1 * jax.random.normal(km2, (C,)),
           jax.random.uniform(kv2, (C,), minval=0.5, maxval=1.5))

    out = temporal_aware_block(x, conv1_w, bn1, conv2_w, bn2, dilation=dilation)
    out = jax.block_until_ready(out)

    ref = _reference(x, conv1_w, bn1, conv2_w, bn2, dilation=dilation)
    assert out.shape == (B, 2 * C, T)
    assert jnp.allclose(out, ref, atol=2e-2, rtol=2e-2), \
        f"max abs err = {jnp.max(jnp.abs(out - ref))}"

    print("KERNEL_OK")
</pallas_src>

<mosaic_0001>
module attributes {stable_mosaic.version = 11 : i64} {
  func.func @_tab_kernel(%arg0: i32, %arg1: memref<1x32x128xf32, #tpu.memory_space<vmem>>, %arg2: memref<32x96xbf16, #tpu.memory_space<vmem>>, %arg3: memref<32x1xf32, #tpu.memory_space<vmem>>, %arg4: memref<32x96xbf16, #tpu.memory_space<vmem>>, %arg5: memref<32x1xf32, #tpu.memory_space<vmem>>, %arg6: memref<1x64x128xf32, #tpu.memory_space<vmem>>, %arg7: memref<32x130xbf16, #tpu.memory_space<vmem>>, %arg8: memref<96x128xbf16, #tpu.memory_space<vmem>>) attributes {dimension_semantics = [#tpu.dimension_semantics<parallel>], iteration_bounds = array<i64: 2>, scalar_prefetch = 0 : i64, scratch_operands = 2 : i64, tpu.core_type = #tpu.core_type<tc>, window_params = [{transform_indices = @transform_0, window_bounds = array<i64: 1, 32, 128>}, {pipeline_mode = #tpu.pipeline_mode<synchronous>, transform_indices = @transform_1, window_bounds = array<i64: 32, 96>}, {pipeline_mode = #tpu.pipeline_mode<synchronous>, transform_indices = @transform_2, window_bounds = array<i64: 32, 1>}, {pipeline_mode = #tpu.pipeline_mode<synchronous>, transform_indices = @transform_3, window_bounds = array<i64: 32, 96>}, {pipeline_mode = #tpu.pipeline_mode<synchronous>, transform_indices = @transform_4, window_bounds = array<i64: 32, 1>}, {transform_indices = @transform_5, window_bounds = array<i64: 1, 64, 128>}]} {
    %cst = arith.constant 0.000000e+00 : bf16
    %0 = vector.broadcast %cst : bf16 to vector<32x1xbf16>
    %c0 = arith.constant 0 : index
    %c0_0 = arith.constant 0 : index
    %1 = vector.load %arg7[%c0, %c0_0] : memref<32x130xbf16, #tpu.memory_space<vmem>>, vector<32x1xbf16>
    tpu.vector_store %arg7[%c0, %c0_0], %0 {strides = array<i32>} : memref<32x130xbf16, #tpu.memory_space<vmem>>, vector<32x1xbf16>,
    %cst_1 = arith.constant 0.000000e+00 : bf16
    %2 = vector.broadcast %cst_1 : bf16 to vector<32x1xbf16>
    %c0_2 = arith.constant 0 : index
    %c129 = arith.constant 129 : index
    %3 = vector.load %arg7[%c0_2, %c129] : memref<32x130xbf16, #tpu.memory_space<vmem>>, vector<32x1xbf16>
    tpu.vector_store %arg7[%c0_2, %c129], %2 {strides = array<i32>} : memref<32x130xbf16, #tpu.memory_space<vmem>>, vector<32x1xbf16>,
    %c0_3 = arith.constant 0 : index
    %c0_4 = arith.constant 0 : index
    %c0_5 = arith.constant 0 : index
    %4 = vector.load %arg1[%c0_3, %c0_4, %c0_5] : memref<1x32x128xf32, #tpu.memory_space<vmem>>, vector<1x32x128xf32>
    %5 = vector.shape_cast %4 : vector<1x32x128xf32> to vector<32x128xf32>
    %6 = arith.truncf %5 : vector<32x128xf32> to vector<32x128xbf16>
    %c0_6 = arith.constant 0 : index
    %c1 = arith.constant 1 : index
    %7 = vector.load %arg7[%c0_6, %c1] : memref<32x130xbf16, #tpu.memory_space<vmem>>, vector<32x128xbf16>
    tpu.vector_store %arg7[%c0_6, %c1], %6 {strides = array<i32>} : memref<32x130xbf16, #tpu.memory_space<vmem>>, vector<32x128xbf16>,
    %c0_7 = arith.constant 0 : index
    %c0_8 = arith.constant 0 : index
    %8 = vector.load %arg7[%c0_7, %c0_8] : memref<32x130xbf16, #tpu.memory_space<vmem>>, vector<32x128xbf16>
    %c0_9 = arith.constant 0 : index
    %c0_10 = arith.constant 0 : index
    %9 = vector.load %arg8[%c0_9, %c0_10] : memref<96x128xbf16, #tpu.memory_space<vmem>>, vector<32x128xbf16>
    tpu.vector_store %arg8[%c0_9, %c0_10], %8 {strides = array<i32>} : memref<96x128xbf16, #tpu.memory_space<vmem>>, vector<32x128xbf16>,
    %c0_11 = arith.constant 0 : index
    %c1_12 = arith.constant 1 : index
    %10 = vector.load %arg7[%c0_11, %c1_12] : memref<32x130xbf16, #tpu.memory_space<vmem>>, vector<32x128xbf16>
    %c32 = arith.constant 32 : index
    %c0_13 = arith.constant 0 : index
    %11 = vector.load %arg8[%c32, %c0_13] : memref<96x128xbf16, #tpu.memory_space<vmem>>, vector<32x128xbf16>
    tpu.vector_store %arg8[%c32, %c0_13], %10 {strides = array<i32>} : memref<96x128xbf16, #tpu.memory_space<vmem>>, vector<32x128xbf16>,
    %c0_14 = arith.constant 0 : index
    %c2 = arith.constant 2 : index
    %12 = vector.load %arg7[%c0_14, %c2] : memref<32x130xbf16, #tpu.memory_space<vmem>>, vector<32x128xbf16>
    %c64 = arith.constant 64 : index
    %c0_15 = arith.constant 0 : index
    %13 = vector.load %arg8[%c64, %c0_15] : memref<96x128xbf16, #tpu.memory_space<vmem>>, vector<32x128xbf16>
    tpu.vector_store %arg8[%c64, %c0_15], %12 {strides = array<i32>} : memref<96x128xbf16, #tpu.memory_space<vmem>>, vector<32x128xbf16>,
    %c0_16 = arith.constant 0 : index
    %c0_17 = arith.constant 0 : index
    %14 = vector.load %arg2[%c0_16, %c0_17] : memref<32x96xbf16, #tpu.memory_space<vmem>>, vector<32x96xbf16>
    %c0_18 = arith.constant 0 : index
    %c0_19 = arith.constant 0 : index
    %15 = vector.load %arg8[%c0_18, %c0_19] : memref<96x128xbf16, #tpu.memory_space<vmem>>, vector<96x128xbf16>
    %cst_20 = arith.constant dense<0.000000e+00> : vector<32x128xf32>
    %16 = tpu.matmul %14, %15, %cst_20 {dimension_numbers = #tpu.dot_dimension_numbers<[1], [0], [0], [1], [0, 0, 1, 1], [], []>} : vector<32x96xbf16>, vector<96x128xbf16>, vector<32x128xf32> -> vector<32x128xf32>
    %c0_21 = arith.constant 0 : index
    %c0_22 = arith.constant 0 : index
    %17 = vector.load %arg3[%c0_21, %c0_22] : memref<32x1xf32, #tpu.memory_space<vmem>>, vector<32x1xf32>
    %18 = vector.broadcast %17 : vector<32x1xf32> to vector<32x128xf32>
    %19 = arith.addf %16, %18 : vector<32x128xf32>
    %cst_23 = arith.constant 5.000000e-01 : f32
    %20 = vector.broadcast %cst_23 : f32 to vector<32x128xf32>
    %21 = arith.mulf %20, %19 : vector<32x128xf32>
    %22 = arith.mulf %19, %19 : vector<32x128xf32>
    %23 = arith.mulf %22, %19 : vector<32x128xf32>
    %cst_24 = arith.constant 4.471500e-02 : f32
    %24 = vector.broadcast %cst_24 : f32 to vector<32x128xf32>
    %25 = arith.mulf %24, %23 : vector<32x128xf32>
    %26 = arith.addf %19, %25 : vector<32x128xf32>
    %cst_25 = arith.constant 0.797884583 : f32
    %27 = vector.broadcast %cst_25 : f32 to vector<32x128xf32>
    %28 = arith.mulf %27, %26 : vector<32x128xf32>
    %29 = math.tanh %28 : vector<32x128xf32>
    %cst_26 = arith.constant 1.000000e+00 : f32
    %30 = vector.broadcast %cst_26 : f32 to vector<32x128xf32>
    %31 = arith.addf %30, %29 : vector<32x128xf32>
    %32 = arith.mulf %21, %31 : vector<32x128xf32>
    %33 = arith.truncf %32 : vector<32x128xf32> to vector<32x128xbf16>
    %c0_27 = arith.constant 0 : index
    %c1_28 = arith.constant 1 : index
    %34 = vector.load %arg7[%c0_27, %c1_28] : memref<32x130xbf16, #tpu.memory_space<vmem>>, vector<32x128xbf16>
    tpu.vector_store %arg7[%c0_27, %c1_28], %33 {strides = array<i32>} : memref<32x130xbf16, #tpu.memory_space<vmem>>, vector<32x128xbf16>,
    %c0_29 = arith.constant 0 : index
    %c0_30 = arith.constant 0 : index
    %35 = vector.load %arg7[%c0_29, %c0_30] : memref<32x130xbf16, #tpu.memory_space<vmem>>, vector<32x128xbf16>
    %c0_31 = arith.constant 0 : index
    %c0_32 = arith.constant 0 : index
    %36 = vector.load %arg8[%c0_31, %c0_32] : memref<96x128xbf16, #tpu.memory_space<vmem>>, vector<32x128xbf16>
    tpu.vector_store %arg8[%c0_31, %c0_32], %35 {strides = array<i32>} : memref<96x128xbf16, #tpu.memory_space<vmem>>, vector<32x128xbf16>,
    %c0_33 = arith.constant 0 : index
    %c1_34 = arith.constant 1 : index
    %37 = vector.load %arg7[%c0_33, %c1_34] : memref<32x130xbf16, #tpu.memory_space<vmem>>, vector<32x128xbf16>
    %c32_35 = arith.constant 32 : index
    %c0_36 = arith.constant 0 : index
    %38 = vector.load %arg8[%c32_35, %c0_36] : memref<96x128xbf16, #tpu.memory_space<vmem>>, vector<32x128xbf16>
    tpu.vector_store %arg8[%c32_35, %c0_36], %37 {strides = array<i32>} : memref<96x128xbf16, #tpu.memory_space<vmem>>, vector<32x128xbf16>,
    %c0_37 = arith.constant 0 : index
    %c2_38 = arith.constant 2 : index
    %39 = vector.load %arg7[%c0_37, %c2_38] : memref<32x130xbf16, #tpu.memory_space<vmem>>, vector<32x128xbf16>
    %c64_39 = arith.constant 64 : index
    %c0_40 = arith.constant 0 : index
    %40 = vector.load %arg8[%c64_39, %c0_40] : memref<96x128xbf16, #tpu.memory_space<vmem>>, vector<32x128xbf16>
    tpu.vector_store %arg8[%c64_39, %c0_40], %39 {strides = array<i32>} : memref<96x128xbf16, #tpu.memory_space<vmem>>, vector<32x128xbf16>,
    %c0_41 = arith.constant 0 : index
    %c0_42 = arith.constant 0 : index
    %41 = vector.load %arg4[%c0_41, %c0_42] : memref<32x96xbf16, #tpu.memory_space<vmem>>, vector<32x96xbf16>
    %c0_43 = arith.constant 0 : index
    %c0_44 = arith.constant 0 : index
    %42 = vector.load %arg8[%c0_43, %c0_44] : memref<96x128xbf16, #tpu.memory_space<vmem>>, vector<96x128xbf16>
    %cst_45 = arith.constant dense<0.000000e+00> : vector<32x128xf32>
    %43 = tpu.matmul %41, %42, %cst_45 {dimension_numbers = #tpu.dot_dimension_numbers<[1], [0], [0], [1], [0, 0, 1, 1], [], []>} : vector<32x96xbf16>, vector<96x128xbf16>, vector<32x128xf32> -> vector<32x128xf32>
    %c0_46 = arith.constant 0 : index
    %c0_47 = arith.constant 0 : index
    %44 = vector.load %arg5[%c0_46, %c0_47] : memref<32x1xf32, #tpu.memory_space<vmem>>, vector<32x1xf32>
    %45 = vector.broadcast %44 : vector<32x1xf32> to vector<32x128xf32>
    %46 = arith.addf %43, %45 : vector<32x128xf32>
    %cst_48 = arith.constant 5.000000e-01 : f32
    %47 = vector.broadcast %cst_48 : f32 to vector<32x128xf32>
    %48 = arith.mulf %47, %46 : vector<32x128xf32>
    %49 = arith.mulf %46, %46 : vector<32x128xf32>
    %50 = arith.mulf %49, %46 : vector<32x128xf32>
    %cst_49 = arith.constant 4.471500e-02 : f32
    %51 = vector.broadcast %cst_49 : f32 to vector<32x128xf32>
    %52 = arith.mulf %51, %50 : vector<32x128xf32>
    %53 = arith.addf %46, %52 : vector<32x128xf32>
    %cst_50 = arith.constant 0.797884583 : f32
    %54 = vector.broadcast %cst_50 : f32 to vector<32x128xf32>
    %55 = arith.mulf %54, %53 : vector<32x128xf32>
    %56 = math.tanh %55 : vector<32x128xf32>
    %cst_51 = arith.constant 1.000000e+00 : f32
    %57 = vector.broadcast %cst_51 : f32 to vector<32x128xf32>
    %58 = arith.addf %57, %56 : vector<32x128xf32>
    %59 = arith.mulf %48, %58 : vector<32x128xf32>
    %60 = arith.negf %59 : vector<32x128xf32>
    %61 = math.exp %60 : vector<32x128xf32>
    %cst_52 = arith.constant 1.000000e+00 : f32
    %62 = vector.broadcast %cst_52 : f32 to vector<32x128xf32>
    %63 = arith.addf %62, %61 : vector<32x128xf32>
    %64 = arith.divf %62, %63 : vector<32x128xf32>
    %c0_53 = arith.constant 0 : index
    %c0_54 = arith.constant 0 : index
    %c0_55 = arith.constant 0 : index
    %65 = vector.load %arg1[%c0_53, %c0_54, %c0_55] : memref<1x32x128xf32, #tpu.memory_space<vmem>>, vector<1x32x128xf32>
    %66 = vector.shape_cast %65 : vector<1x32x128xf32> to vector<32x128xf32>
    %67 = arith.mulf %66, %64 : vector<32x128xf32>
    %c0_56 = arith.constant 0 : index
    %c0_57 = arith.constant 0 : index
    %c0_58 = arith.constant 0 : index
    %68 = vector.load %arg6[%c0_56, %c0_57, %c0_58] : memref<1x64x128xf32, #tpu.memory_space<vmem>>, vector<1x32x128xf32>
    %69 = vector.shape_cast %68 : vector<1x32x128xf32> to vector<32x128xf32>
    %70 = vector.shape_cast %67 : vector<32x128xf32> to vector<1x32x128xf32>
    tpu.vector_store %arg6[%c0_56, %c0_57, %c0_58], %70 {strides = array<i32>} : memref<1x64x128xf32, #tpu.memory_space<vmem>>, vector<1x32x128xf32>,
    %c0_59 = arith.constant 0 : index
    %c32_60 = arith.constant 32 : index
    %c0_61 = arith.constant 0 : index
    %71 = vector.load %arg6[%c0_59, %c32_60, %c0_61] : memref<1x64x128xf32, #tpu.memory_space<vmem>>, vector<1x32x128xf32>
    %72 = vector.shape_cast %71 : vector<1x32x128xf32> to vector<32x128xf32>
    %73 = vector.shape_cast %66 : vector<32x128xf32> to vector<1x32x128xf32>
    tpu.vector_store %arg6[%c0_59, %c32_60, %c0_61], %73 {strides = array<i32>} : memref<1x64x128xf32, #tpu.memory_space<vmem>>, vector<1x32x128xf32>,
    return
  }
  func.func @transform_0(%arg0: i32) -> (i32, i32, i32) {
    %c0_i32 = arith.constant 0 : i32
    %c0_i32_0 = arith.constant 0 : i32
    %c0_i32_1 = arith.constant 0 : i32
    return %arg0, %c0_i32, %c0_i32_0 : i32, i32, i32
  }
  func.func @transform_1(%arg0: i32) -> (i32, i32) {
    %c0_i32 = arith.constant 0 : i32
    %c0_i32_0 = arith.constant 0 : i32
    %c0_i32_1 = arith.constant 0 : i32
    return %c0_i32, %c0_i32_0 : i32, i32
  }
  func.func @transform_2(%arg0: i32) -> (i32, i32) {
    %c0_i32 = arith.constant 0 : i32
    %c0_i32_0 = arith.constant 0 : i32
    %c0_i32_1 = arith.constant 0 : i32
    return %c0_i32, %c0_i32_0 : i32, i32
  }
  func.func @transform_3(%arg0: i32) -> (i32, i32) {
    %c0_i32 = arith.constant 0 : i32
    %c0_i32_0 = arith.constant 0 : i32
    %c0_i32_1 = arith.constant 0 : i32
    return %c0_i32, %c0_i32_0 : i32, i32
  }
  func.func @transform_4(%arg0: i32) -> (i32, i32) {
    %c0_i32 = arith.constant 0 : i32
    %c0_i32_0 = arith.constant 0 : i32
    %c0_i32_1 = arith.constant 0 : i32
    return %c0_i32, %c0_i32_0 : i32, i32
  }
  func.func @transform_5(%arg0: i32) -> (i32, i32, i32) {
    %c0_i32 = arith.constant 0 : i32
    %c0_i32_0 = arith.constant 0 : i32
    %c0_i32_1 = arith.constant 0 : i32
    return %arg0, %c0_i32, %c0_i32_0 : i32, i32, i32
  }
}

</mosaic_0001>

<bundles_post_ra>
// kernel: tpu_custom_call.1
= control target key start
LH: loop header
LB: loop body
LE: loop exit
PB: predicated region body
PF: predicated region fallthrough
CT: control target
= control target key end

     0   :  { %10 = vsyncpa [#allocation5], 0  ;;  %s1429_s0 = inlined_call_operand.vmem [shape: f32[2,32,128], index: 0, kind: input, shape index: {}]   ;;  %s1430_s1 = inlined_call_operand.hbm [shape: bf16[32,96], index: 1, kind: input, shape index: {}]   ;;  %s1431_s2 = inlined_call_operand.vmem [shape: f32[32,1], index: 2, kind: input, shape index: {}]   ;;  %s1432_s3 = inlined_call_operand.hbm [shape: bf16[32,96], index: 3, kind: input, shape index: {}]   ;;  %s1433_s4 = inlined_call_operand.vmem [shape: f32[32,1], index: 4, kind: input, shape index: {}]   ;;  %s1434_s5 = inlined_call_operand.hbm [shape: f32[2,64,128], index: 5, kind: output, shape index: {}]  }
   0x1   :  { %11 = vsyncpa [#allocation8], 0 }
   0x2   :  { %12 = vsyncpa [#allocation6], 0 }
   0x3   :  { %14 = vsyncpa [#allocation6 + $0x1], 0  ;;  %s1153_s18 = smov 0   ;;  %s1155_s19 = smov 0  }
   0x4   :  { %s1157_s20 = smov 0   ;;  %s1159_s21 = smov 0  }
   0x5 LB: > { %s1174_s22 = sadd.s32 4294967295, %s1110_s21   ;;  %s800_s23 = sadd.s32 4294967294, %s1110_s21   ;;  %s1110_s21 = sphi %s1159_s21, %s1452_s21   ;;  %s1106_s20 = sphi %s1157_s20, %s1451_s20   ;;  %s1102_s19 = sphi %s1155_s19, %s1450_s19   ;;  %s1098_s18 = sphi %s1153_s18, %s1449_s18  }
   0x6   : > { %s1178_s24 = sadd.s32 1, %s1110_s21   ;;  %s137_s25 = sadd.s32 1, %s1106_s20 }
   0x7   : > { %s134_s26 = ssub.s32 %s1110_s21, %s1178_s24  ;;  %p147_p0 = scmp.ne.s32.totalorder %s1106_s20, %s1102_s19 }
   0x8   : > { %p135_p1 = scmp.eq.s32.totalorder %s134_s26, 0  ;;  %p148_p2 = scmp.eq.s32.totalorder %s1174_s22, 1 }
   0x9   : > { %p153_p3 = scmp.ne.s32.totalorder %s1102_s19, %s1098_s18  ;;  %p154_p4 = scmp.eq.s32.totalorder %s800_s23, 1 }
   0xa   : > { %s1189_s27 = scalar_select %p135_p1, %s1106_s20, %s137_s25  }
   0xb   : > { %p1191_p5 = por %p148_p2, %p147_p0  ;;  %p1195_p6 = por %p154_p4, %p153_p3 }
   0xc   : > { %p801_p7 = scmp.ge.s32.totalorder %s1110_s21, 1  ;;  %p161_p8 = scmp.lt.s32.totalorder %s1110_s21, 3 }
   0xd   : > { %s1438_s28 = scalar_select %p1191_p5, 1, 0 }
   0xe   : > { %s1439_s29 = scalar_select %p1195_p6, 1, 0 }
   0xf   : > { %p1435_p9 = scmp.eq.s32.totalorder %s1174_s22, 0  ;;  %p1202_p10 = pnand %p801_p7, %p161_p8 }
  0x10   : > { %s1112_s6 = smov [#allocation4]   ;;  %s1113_s9 = smov [#allocation7]  }
  0x11   : > { %s1440_s30 = scalar_select %p1202_p10, 1, 0 }
  0x12   : > { %s173_s7 = sshll.u32 %s1112_s6, 4  ;;  %p888_p11 = pneg %p1202_p10  ;;  %s174_s7 = int_to_ptr.vmem [resolvable:$true] %s173_s7 }
  0x13   : > { %s189_s10 = sshll.u32 %s1113_s9, 4  ;;  %s984_s13 = scalar_lea.hbm %s1430_s1, 256  ;;  %s1214_s10 = int_to_ptr.vmem [resolvable:$true] %s189_s10 }
  0x14   : > { %p1210_p12 = pnand %p1435_p9, %p888_p11  ;;  %p985_p13 = scmp.ne.s32.totalorder %s1430_s1, %s984_s13 }
  0x15   : > { %p991_p3 = scmp.lt.u32.totalorder %s984_s13, %s1430_s1 }
  0x16   : > { %p986_p0 = pneg %p1210_p12 }
  0x18   : > { %p987_p1 = pnand %p986_p0, %p985_p13 }
  0x1a   : > { %p988_p2 = pneg %p987_p1 }
  0x1c   : > { %p993_p4 = pnand %p991_p3, %p988_p2 }
  0x1e   : > { %996 = shalt.err (!%p993_p4)
}
  0x1f   : > { %s997_s23 = scalar_lea.vmem %s174_s7, 256  ;;  %p1005_p9 = scmp.lt.s32.totalorder %s174_s7, %s174_s7 }
  0x20   : > { %p998_p7 = scmp.ne.s32.totalorder %s174_s7, %s997_s23  ;;  %p1006_p6 = scmp.lt.s32.totalorder %s997_s23, %s997_s23 }
  0x22   : > { %p1000_p8 = pnand %p998_p7, %p986_p0  ;;  %p1007_p5 = por %p1006_p6, %p1005_p9 }
  0x24   : > { %p1001_p11 = pneg %p1000_p8 }
  0x26   : > { %p1008_p10 = pnand %p1007_p5, %p1001_p11 }
  0x28   : > { %1011 = shalt.err (!%p1008_p10)
}
  0x29   : > { %s1114_s25 = smov 64   ;;  %s1115_s26 = smov 4  }
  0x2a   : > { %891 = dma.hbm_to_vmem [thread:$0]  (!%p1210_p12), %s1430_s1, 256, %s174_s7, [#allocation5], %s1114_s25, %s1114_s25, %s1115_s26  }
  0x2b   : > { %s1012_s13 = scalar_lea.hbm %s1432_s3, 256 }
  0x2c   : > { %p1013_p13 = scmp.ne.s32.totalorder %s1432_s3, %s1012_s13  ;;  %p1019_p9 = scmp.lt.u32.totalorder %s1012_s13, %s1432_s3 }
  0x2e   : > { %p1015_p5 = pnand %p1013_p13, %p986_p0 }
  0x30   : > { %p1016_p6 = pneg %p1015_p5 }
  0x32   : > { %p1021_p10 = pnand %p1019_p9, %p1016_p6 }
  0x34   : > { %1024 = shalt.err (!%p1021_p10)
}
  0x35   : > { %s1025_s7 = scalar_lea.vmem %s1214_s10, 256  ;;  %p1033_p4 = scmp.lt.s32.totalorder %s1214_s10, %s1214_s10 }
  0x36   : > { %p1026_p1 = scmp.ne.s32.totalorder %s1214_s10, %s1025_s7  ;;  %p1034_p7 = scmp.lt.s32.totalorder %s1025_s7, %s1025_s7 }
  0x38   : > { %p1028_p2 = pnand %p1026_p1, %p986_p0  ;;  %p1035_p8 = por %p1034_p7, %p1033_p4 }
  0x3a   : > { %p1029_p3 = pneg %p1028_p2 }
  0x3c   : > { %p1036_p11 = pnand %p1035_p8, %p1029_p3 }
  0x3e   : > { %1039 = shalt.err (!%p1036_p11)
}
  0x3f   : > { %894 = dma.hbm_to_vmem [thread:$0]  (!%p1210_p12), %s1432_s3, 256, %s1214_s10, [#allocation8], %s1114_s25, %s1114_s25, %s1115_s26  }
  0x40   : > { %p1442_p13 = scmp.ne.s32.totalorder %s1440_s30, 0 }
  0x41   : > { %p1443_p5 = scmp.eq.s32.totalorder (!%p1442_p13), %s1174_s22, 0 }
  0x42   : > { %216 = sbr.rel (%p1442_p13) target bundleno = 1131 (0x46b), region = 40 }
  0x49   : > { %1085 = dma.done.wait (%p1443_p5), [#allocation5], 256   ;;  %p1444_p0 = pmov %p1443_p5 }
  0x4b   : > { %1087 = vsyncadd (%p1444_p0), [#allocation5], 4294967040  ;;  %p1445_p6 = pmov %p1444_p0 }
  0x4c   : > { %p1446_p9 = pmov %p1444_p0 }
  0x4d   : > { %1089 = dma.done.wait (%p1445_p6), [#allocation8], 256  }
  0x4e   : > { %1091 = vsyncadd (%p1446_p9), [#allocation8], 4294967040  ;;  %p248_p10 = scmp.lt.s32.totalorder %s1174_s22, 1  ;;  %vm254_vm0 = vcmask 7168   ;;  %vm257_vm1 = vcmask 15368   ;;  %v1116_v0 = vmov 0  }
  0x4f   : > { %255 = vst.msk [vmem:[#allocation2] sm:$0xff] %vm254_vm0, %v1116_v0  ;;  %256 = vst.msk [vmem:[#allocation2 + $0x10] sm:$0xff] %vm254_vm0, %v1116_v0  ;;  %947 = vset.pattern.permute.xlu1 %v1116_v0  ;;  %946 = vset.pattern.permute.xlu0 %v1116_v0  ;;  %s1117_s9 = smov 1   ;;  %vm274_vm2 = vcmask 1047560   ;;  %s1118_s11 = smov 127   ;;  %v948_v13 = vld [vmem:[#allocation4] sm:$0xff]  }
  0x50   : > { %s249_s30 = scalar_select %p248_p10, %s1174_s22, 1  ;;  %258 = vst.msk [vmem:[#allocation2 + $0x8] sm:$0xff] %vm257_vm1, %v1116_v0  ;;  %259 = vst.msk [vmem:[#allocation2 + $0x18] sm:$0xff] %vm257_vm1, %v1116_v0  ;;  %vm373_vm3 = vcmask 785408   ;;  %v339_v14 = vld [vmem:[%s1431_s2] sm:$0xff]  ;;  %v340_v15 = vld [vmem:[%s1431_s2 + $0x8] sm:$0xff] }
  0x51   : > { %858 = vmatprep.mubr.msk.bf16.mxu0 %vm373_vm3, %v948_v13  ;;  %s1119_s12 = smov 126   ;;  %v342_v16 = vld [vmem:[%s1431_s2 + $0x18] sm:$0xff]  ;;  %v341_v17 = vld [vmem:[%s1431_s2 + $0x10] sm:$0xff]  ;;  %vm299_vm4 = vcmask 1039360   ;;  %vm322_vm5 = vcmask 1031168   ;;  %v949_v30 = vld [vmem:[#allocation4 + $0x8] sm:$0xff]  }
  0x52   : > { %s828_s8 = sshll.u32 %s249_s30, 5  ;;  %s245_s14 = sand.u32 1, %s1102_s19  }
  0x53   : > { %s252_s26 = scalar_lea.vmem %s1429_s0, %s828_s8  ;;  %s829_s16 = sshll.u32 %s1174_s22, 10 }
  0x54   : > { %v1280_v1 = vld [vmem:[%s252_s26] sm:$0xff]  ;;  %v1282_v2 = vld [vmem:[%s252_s26 + $0x8] sm:$0xff]  ;;  %v1284_v3 = vld [vmem:[%s252_s26 + $0x10] sm:$0xff]  ;;  %s1378_s6 = scalar_lea.hbm %s1434_s5, %s829_s16  ;;  %s1388_s22 = scalar_lea.sflag [#allocation6], %s245_s14 }
  0x55   : > { %v264_v4 = vpack.c.bf16 %v1282_v2, %v1280_v1  ;;  %v1288_v5 = vld [vmem:[%s252_s26 + $0x18] sm:$0xff]  ;;  %p1447_p1 = scmp.ne.s32.totalorder %s1438_s28, 0  ;;  %s1120_s8 = smov [#allocation9]  }
  0x56   : > { %v265_v6 = vpack.c.bf16 %v1288_v5, %v1284_v3  ;;  %s1044_s10 = sshll.u32 %s1120_s8, 4  ;;  %s1045_s10 = int_to_ptr.vmem [resolvable:$false] %s1044_s10 }
  0x57   : > { %268 = vrot.lane.b32.xlu0 %v264_v4, %s1117_s9  ;;  %s1046_s25 = scalar_lea.vmem %s1045_s10, 2048 }
  0x5b   : > { %270 = vrot.lane.b32.xlu0 %v265_v6, %s1117_s9 }
  0xc9   : > { %v269_v7 = vpop.permute.xlu0 %268 }
  0xca   : > { %275 = vst.msk [vmem:[#allocation2] sm:$0xff] %vm274_vm2, %v269_v7 }
  0xcb   : > { %276 = vst.msk [vmem:[#allocation2 + $0x8] sm:$0xff] %vm254_vm0, %v269_v7 }
  0xcd   : > { %v271_v8 = vpop.permute.xlu0 %270 }
  0xce   : > { %277 = vst.msk [vmem:[#allocation2 + $0x10] sm:$0xff] %vm274_vm2, %v271_v8 }
  0xcf   : > { %278 = vst.msk [vmem:[#allocation2 + $0x18] sm:$0xff] %vm254_vm0, %v271_v8 }
  0xd1   : > { %v283_v9 = vld [vmem:[#allocation2] sm:$0xff] }
  0xd2   : > { %291 = vrot.lane.b32.xlu1 %v283_v9, %s1118_s11  ;;  %846 = vmatprep.subr.bf16.mxu0 %v283_v9  ;;  %v284_v11 = vld [vmem:[#allocation2 + $0x8] sm:$0xff] }
  0xd3   : > { %847 = vmatpush3.bf16.msra.mxu0 %v283_v9 }
  0xd5   : > { %v285_v10 = vld [vmem:[#allocation2 + $0x10] sm:$0xff] }
  0xd6   : > { %295 = vrot.lane.b32.xlu0 %v285_v10, %s1118_s11  ;;  %293 = vrot.lane.b32.xlu1 %v284_v11, %s1118_s11  ;;  %v286_v12 = vld [vmem:[#allocation2 + $0x18] sm:$0xff] }
  0xd7   : > { %848 = vmatprep.subr.bf16.mxu0 %v285_v10 }
  0xd8   : > { %849 = vmatpush3.bf16.msra.mxu0 %v285_v10 }
  0xda   : > { %314 = vrot.lane.b32.xlu0 %v283_v9, %s1119_s12  ;;  %297 = vrot.lane.b32.xlu1 %v286_v12, %s1118_s11 }
  0xde   : > { %318 = vrot.lane.b32.xlu0 %v285_v10, %s1119_s12  ;;  %316 = vrot.lane.b32.xlu1 %v284_v11, %s1119_s12 }
  0xe2   : > { %320 = vrot.lane.b32.xlu1 %v286_v12, %s1119_s12  ;;  %345 = vperm.xlu0 %946, %v339_v14  }
  0xe6   : > { %350 = vperm.xlu1 %947, %v340_v15   ;;  %360 = vperm.xlu0 %946, %v342_v16  }
  0xea   : > { %355 = vperm.xlu1 %947, %v341_v17  }
 0x144   : > { %v292_v18 = vpop.permute.xlu1 %291 }
 0x148   : > { %v296_v19 = vpop.permute.xlu0 %295  ;;  %v294_v20 = vpop.permute.xlu1 %293 }
 0x149   : > { %v300_v21 = vsel %vm299_vm4, %v292_v18, %v294_v20 }
 0x14a   : > { %850 = vmatprep.subr.bf16.mxu0 %v300_v21 }
 0x14b   : > { %851 = vmatpush3.bf16.msra.mxu0 %v300_v21 }
 0x14c   : > { %v298_v22 = vpop.permute.xlu1 %297  ;;  %v315_v24 = vpop.permute.xlu0 %314 }
 0x14d   : > { %v301_v23 = vsel %vm299_vm4, %v296_v19, %v298_v22 }
 0x14e   : > { %852 = vmatprep.subr.bf16.mxu0 %v301_v23 }
 0x14f   : > { %853 = vmatpush3.bf16.msra.mxu0 %v301_v23 }
 0x150   : > { %v317_v25 = vpop.permute.xlu1 %316  ;;  %v319_v27 = vpop.permute.xlu0 %318 }
 0x151   : > { %v323_v26 = vsel %vm322_vm5, %v315_v24, %v317_v25  ;;  %v950_v25 = vld [vmem:[#allocation7] sm:$0xff]  }
 0x152   : > { %854 = vmatprep.subr.bf16.mxu0 %v323_v26  ;;  %874 = vmatprep.mubr.msk.bf16.mxu1 %vm373_vm3, %v950_v25 }
 0x153   : > { %855 = vmatpush3.bf16.msra.mxu0 %v323_v26 }
 0x154   : > { %v321_v28 = vpop.permute.xlu1 %320 }
 0x155   : > { %v324_v29 = vsel %vm322_vm5, %v319_v27, %v321_v28  ;;  %v538_v28 = vld [vmem:[%s1433_s4 + $0x8] sm:$0xff] }
 0x156   : > { %856 = vmatprep.subr.bf16.mxu0 %v324_v29 }
 0x157   : > { %857 = vmatpush3.bf16.msra.mxu0 %v324_v29  ;;  %v537_v29 = vld [vmem:[%s1433_s4] sm:$0xff] }
 0x15a   : > { %859 = vmatmul.mubr.msk.bf16.vlgmr.msra.gmra.mrb[0].mxu0 %vm373_vm3, %v949_v30  ;;  %v540_v30 = vld [vmem:[%s1433_s4 + $0x18] sm:$0xff] }
 0x161   : > { %v346_v32 = vpop.permute.xlu0 %345 }
 0x165   : > { %v351_v31 = vpop.permute.xlu1 %350  ;;  %v361_v35 = vpop.permute.xlu0 %360 }
 0x169   : > { %v356_v33 = vpop.permute.xlu1 %355 }
 0x22d   : > { %v860_v34 = vpop.f32.mrb[0].mxu0 }
 0x22e   : > { %v423_v36 = vadd.f32 %v860_v34, %v356_v33  ;;  %v414_v37 = vpop.f32.mrb[1].mxu0 }
 0x22f   : > { %v415_v38 = vadd.f32 %v414_v37, %v346_v32  ;;  %v861_v39 = vpop.f32.mrb[2].mxu0 }
 0x230   : > { %v435_v40 = vmul.f32 %v423_v36, %v423_v36  ;;  %v426_v41 = vadd.f32 %v861_v39, %v361_v35  ;;  %v417_v42 = vpop.f32.mrb[3].mxu0  ;;  %v431_v9 = vmul.f32 0.5, %v423_v36 }
 0x231   : > { %v433_v43 = vmul.f32 %v415_v38, %v415_v38  ;;  %v418_v44 = vadd.f32 %v417_v42, %v351_v31  ;;  %v429_v12 = vmul.f32 0.5, %v415_v38  ;;  %v539_v31 = vld [vmem:[%s1433_s4 + $0x10] sm:$0xff] }
 0x232   : > { %v439_v45 = vmul.f32 %v435_v40, %v423_v36  ;;  %v436_v46 = vmul.f32 %v426_v41, %v426_v41  ;;  %v432_v10 = vmul.f32 0.5, %v426_v41 }
 0x233   : > { %v437_v47 = vmul.f32 %v433_v43, %v415_v38  ;;  %v434_v48 = vmul.f32 %v418_v44, %v418_v44  ;;  %v430_v13 = vmul.f32 0.5, %v418_v44 }
 0x234   : > { %v443_v49 = vmul.f32 0.044715, %v439_v45  ;;  %v440_v50 = vmul.f32 %v436_v46, %v426_v41 }
 0x235   : > { %v441_v51 = vmul.f32 0.044715, %v437_v47  ;;  %v438_v52 = vmul.f32 %v434_v48, %v418_v44 }
 0x236   : > { %v447_v53 = vadd.f32 %v443_v49, %v423_v36  ;;  %v444_v54 = vmul.f32 0.044715, %v440_v50 }
 0x237   : > { %v445_v55 = vadd.f32 %v441_v51, %v415_v38  ;;  %v442_v56 = vmul.f32 0.044715, %v438_v52 }
 0x238   : > { %v451_v57 = vmul.f32 0.7978846, %v447_v53  ;;  %v448_v58 = vadd.f32 %v444_v54, %v426_v41 }
 0x239   : > { %v449_v59 = vmul.f32 0.7978846, %v445_v55  ;;  %v446_v60 = vadd.f32 %v442_v56, %v418_v44  ;;  %v951_v44 = vld [vmem:[#allocation7 + $0x8] sm:$0xff]  }
 0x23a   : > { %952 = vtanh.f32 %v451_v57  ;;  %v452_v61 = vmul.f32 0.7978846, %v448_v58 }
 0x23b   : > { %954 = vtanh.f32 %v449_v59  ;;  %v450_v62 = vmul.f32 0.7978846, %v446_v60 }
 0x23c   : > { %956 = vtanh.f32 %v452_v61 }
 0x23d   : > { %958 = vtanh.f32 %v450_v62 }
 0x244   : > { %v953_v63 = vpop.eup %952 }
 0x245   : > { %v955_v0 = vpop.eup %954  ;;  %v459_v4 = vadd.f32 1.0, %v953_v63 }
 0x246   : > { %v957_v6 = vpop.eup %956  ;;  %v457_v7 = vadd.f32 1.0, %v955_v0 }
 0x247   : > { %v959_v8 = vpop.eup %958  ;;  %v460_v11 = vadd.f32 1.0, %v957_v6  ;;  %v463_v15 = vmul.f32 %v459_v4, %v431_v9 }
 0x248   : > { %v458_v14 = vadd.f32 1.0, %v959_v8  ;;  %v461_v17 = vmul.f32 %v457_v7, %v429_v12 }
 0x249   : > { %v464_v16 = vmul.f32 %v460_v11, %v432_v10 }
 0x24a   : > { %v462_v18 = vmul.f32 %v458_v14, %v430_v13 }
 0x24b   : > { %v466_v19 = vpack.c.bf16 %v464_v16, %v463_v15 }
 0x24c   : > { %v465_v20 = vpack.c.bf16 %v462_v18, %v461_v17 }
 0x24d   : > { %471 = vrot.lane.b32.xlu0 %v466_v19, %s1117_s9 }
 0x24e   : > { %469 = vrot.lane.b32.xlu1 %v465_v20, %s1117_s9 }
 0x2bf   : > { %v472_v21 = vpop.permute.xlu0 %471 }
 0x2c0   : > { %477 = vst.msk [vmem:[#allocation2 + $0x10] sm:$0xff] %vm274_vm2, %v472_v21  ;;  %v470_v22 = vpop.permute.xlu1 %469 }
 0x2c1   : > { %478 = vst.msk [vmem:[#allocation2 + $0x18] sm:$0xff] %vm254_vm0, %v472_v21  ;;  %476 = vst.msk [vmem:[#allocation2 + $0x8] sm:$0xff] %vm254_vm0, %v470_v22 }
 0x2c2   : > { %475 = vst.msk [vmem:[#allocation2] sm:$0xff] %vm274_vm2, %v470_v22 }
 0x2c7   : > { %v480_v26 = vld [vmem:[#allocation2 + $0x10] sm:$0xff] }
 0x2c8   : > { %v484_v23 = vld [vmem:[#allocation2 + $0x8] sm:$0xff]  ;;  %v486_v27 = vld [vmem:[#allocation2 + $0x18] sm:$0xff] }
 0x2c9   : > { %v483_v24 = vld [vmem:[#allocation2] sm:$0xff]  ;;  %493 = vrot.lane.b32.xlu0 %v484_v23, %s1118_s11 }
 0x2ca   : > { %491 = vrot.lane.b32.xlu1 %v483_v24, %s1118_s11  ;;  %862 = vmatprep.subr.bf16.mxu1 %v483_v24 }
 0x2cb   : > { %863 = vmatpush3.bf16.msra.mxu1 %v483_v24 }
 0x2cc   : > { %864 = vmatprep.subr.bf16.mxu1 %v480_v26 }
 0x2cd   : > { %497 = vrot.lane.b32.xlu0 %v486_v27, %s1118_s11 }
 0x2ce   : > { %495 = vrot.lane.b32.xlu1 %v480_v26, %s1118_s11 }
 0x2cf   : > { %865 = vmatpush3.bf16.msra.mxu1 %v480_v26 }
 0x2d1   : > { %515 = vrot.lane.b32.xlu0 %v484_v23, %s1119_s12 }
 0x2d2   : > { %513 = vrot.lane.b32.xlu1 %v483_v24, %s1119_s12 }
 0x2d5   : > { %519 = vrot.lane.b32.xlu0 %v486_v27, %s1119_s12 }
 0x2d6   : > { %517 = vrot.lane.b32.xlu1 %v480_v26, %s1119_s12  ;;  %s808_s12 = sshll.u32 %s245_s14, 6 }
 0x2d7   : > { %s1354_s15 = scalar_lea.vmem [#allocation9], %s808_s12 }
 0x2d8   : > { %700 = vst [vmem:[%s1354_s15 + $0x30] sm:$0xff] %v1284_v3  ;;  %698 = vst [vmem:[%s1354_s15 + $0x20] sm:$0xff] %v1280_v1  ;;  %s716_s17 = sshll.u32 %s1354_s15, 4  ;;  %s1380_s17 = int_to_ptr.vmem [resolvable:$true] %s716_s17 }
 0x2d9   : > { %548 = vperm.xlu0 %946, %v538_v28   ;;  %701 = vst [vmem:[%s1354_s15 + $0x38] sm:$0xff] %v1288_v5  ;;  %699 = vst [vmem:[%s1354_s15 + $0x28] sm:$0xff] %v1282_v2  ;;  %s1040_s30 = scalar_lea.vmem %s1380_s17, 1024  ;;  %p1047_p4 = scmp.lt.s32.totalorder %s1380_s17, %s1045_s10 }
 0x2da   : > { %543 = vperm.xlu1 %947, %v537_v29   ;;  %p1041_p12 = scmp.ne.s32.totalorder %s1380_s17, %s1040_s30  ;;  %p1048_p7 = scmp.lt.s32.totalorder %s1046_s25, %s1040_s30 }
 0x2dc   : > { %p1042_p2 = pnand %p1041_p12, %p1447_p1  ;;  %p1049_p8 = por %p1048_p7, %p1047_p4 }
 0x2dd   : > { %558 = vperm.xlu0 %946, %v540_v30  }
 0x2de   : > { %553 = vperm.xlu1 %947, %v539_v31   ;;  %p1043_p3 = pneg %p1042_p2 }
 0x2e0   : > { %p1050_p11 = pnand %p1049_p8, %p1043_p3 }
 0x33b   : > { %v494_v32 = vpop.permute.xlu0 %493 }
 0x33c   : > { %v492_v33 = vpop.permute.xlu1 %491 }
 0x33d   : > { %v499_v34 = vsel %vm299_vm4, %v492_v33, %v494_v32 }
 0x33e   : > { %866 = vmatprep.subr.bf16.mxu1 %v499_v34 }
 0x33f   : > { %867 = vmatpush3.bf16.msra.mxu1 %v499_v34  ;;  %v498_v35 = vpop.permute.xlu0 %497 }
 0x340   : > { %v496_v36 = vpop.permute.xlu1 %495 }
 0x341   : > { %v500_v37 = vsel %vm299_vm4, %v496_v36, %v498_v35 }
 0x342   : > { %868 = vmatprep.subr.bf16.mxu1 %v500_v37 }
 0x343   : > { %869 = vmatpush3.bf16.msra.mxu1 %v500_v37  ;;  %v516_v38 = vpop.permute.xlu0 %515 }
 0x344   : > { %v514_v39 = vpop.permute.xlu1 %513 }
 0x345   : > { %v521_v40 = vsel %vm322_vm5, %v514_v39, %v516_v38 }
 0x346   : > { %870 = vmatprep.subr.bf16.mxu1 %v521_v40 }
 0x347   : > { %871 = vmatpush3.bf16.msra.mxu1 %v521_v40  ;;  %v520_v41 = vpop.permute.xlu0 %519 }
 0x348   : > { %v518_v42 = vpop.permute.xlu1 %517 }
 0x349   : > { %v522_v43 = vsel %vm322_vm5, %v518_v42, %v520_v41 }
 0x34a   : > { %872 = vmatprep.subr.bf16.mxu1 %v522_v43 }
 0x34b   : > { %873 = vmatpush3.bf16.msra.mxu1 %v522_v43 }
 0x34e   : > { %875 = vmatmul.mubr.msk.bf16.vlgmr.msra.gmra.mrb[0].mxu1 %vm373_vm3, %v951_v44 }
 0x358   : > { %v549_v46 = vpop.permute.xlu0 %548 }
 0x359   : > { %v544_v45 = vpop.permute.xlu1 %543 }
 0x35c   : > { %v559_v51 = vpop.permute.xlu0 %558 }
 0x35d   : > { %v554_v47 = vpop.permute.xlu1 %553 }
 0x421   : > { %v876_v48 = vpop.f32.mrb[0].mxu1 }
 0x422   : > { %v620_v49 = vadd.f32 %v876_v48, %v554_v47  ;;  %v611_v50 = vpop.f32.mrb[1].mxu1 }
 0x423   : > { %v612_v52 = vadd.f32 %v611_v50, %v544_v45  ;;  %v877_v53 = vpop.f32.mrb[2].mxu1 }
 0x424   : > { %v632_v54 = vmul.f32 %v620_v49, %v620_v49  ;;  %v623_v55 = vadd.f32 %v877_v53, %v559_v51  ;;  %v614_v56 = vpop.f32.mrb[3].mxu1  ;;  %v628_v19 = vmul.f32 0.5, %v620_v49 }
 0x425   : > { %v630_v57 = vmul.f32 %v612_v52, %v612_v52  ;;  %v615_v58 = vadd.f32 %v614_v56, %v549_v46  ;;  %v626_v22 = vmul.f32 0.5, %v612_v52 }
 0x426   : > { %v636_v59 = vmul.f32 %v632_v54, %v620_v49  ;;  %v633_v60 = vmul.f32 %v623_v55, %v623_v55  ;;  %v629_v26 = vmul.f32 0.5, %v623_v55 }
 0x427   : > { %v634_v61 = vmul.f32 %v630_v57, %v612_v52  ;;  %v631_v62 = vmul.f32 %v615_v58, %v615_v58  ;;  %v627_v29 = vmul.f32 0.5, %v615_v58 }
 0x428   : > { %v640_v63 = vmul.f32 0.044715, %v636_v59  ;;  %v637_v0 = vmul.f32 %v633_v60, %v623_v55 }
 0x429   : > { %v638_v4 = vmul.f32 0.044715, %v634_v61  ;;  %v635_v6 = vmul.f32 %v631_v62, %v615_v58 }
 0x42a   : > { %v644_v7 = vadd.f32 %v640_v63, %v620_v49  ;;  %v641_v8 = vmul.f32 0.044715, %v637_v0 }
 0x42b   : > { %v642_v9 = vadd.f32 %v638_v4, %v612_v52  ;;  %v639_v10 = vmul.f32 0.044715, %v635_v6 }
 0x42c   : > { %v648_v11 = vmul.f32 0.7978846, %v644_v7  ;;  %v645_v12 = vadd.f32 %v641_v8, %v623_v55 }
 0x42d   : > { %v646_v13 = vmul.f32 0.7978846, %v642_v9  ;;  %v643_v14 = vadd.f32 %v639_v10, %v615_v58 }
 0x42e   : > { %960 = vtanh.f32 %v648_v11  ;;  %v649_v15 = vmul.f32 0.7978846, %v645_v12 }
 0x42f   : > { %962 = vtanh.f32 %v646_v13  ;;  %v647_v16 = vmul.f32 0.7978846, %v643_v14 }
 0x430   : > { %964 = vtanh.f32 %v649_v15 }
 0x431   : > { %966 = vtanh.f32 %v647_v16 }
 0x438   : > { %v961_v17 = vpop.eup %960 }
 0x439   : > { %v963_v18 = vpop.eup %962  ;;  %v656_v20 = vadd.f32 1.0, %v961_v17 }
 0x43a   : > { %v965_v21 = vpop.eup %964  ;;  %v654_v23 = vadd.f32 1.0, %v963_v18 }
 0x43b   : > { %v967_v24 = vpop.eup %966  ;;  %v660_v25 = vmul.f32 %v656_v20, %v628_v19  ;;  %v657_v27 = vadd.f32 1.0, %v965_v21 }
 0x43c   : > { %v658_v28 = vmul.f32 %v654_v23, %v626_v22  ;;  %v655_v30 = vadd.f32 1.0, %v967_v24 }
 0x43d   : > { %v821_v31 = vmul.f32 -1.442695, %v660_v25  ;;  %v661_v32 = vmul.f32 %v657_v27, %v629_v26 }
 0x43e   : > { %v819_v33 = vmul.f32 -1.442695, %v658_v28  ;;  %v659_v34 = vmul.f32 %v655_v30, %v627_v29 }
 0x43f   : > { %968 = vpow2.f32 %v821_v31  ;;  %v822_v35 = vmul.f32 -1.442695, %v661_v32 }
 0x440   : > { %970 = vpow2.f32 %v819_v33  ;;  %v820_v36 = vmul.f32 -1.442695, %v659_v34 }
 0x441   : > { %972 = vpow2.f32 %v822_v35 }
 0x442   : > { %974 = vpow2.f32 %v820_v36 }
 0x449   : > { %v969_v37 = vpop.eup %968 }
 0x44a   : > { %v971_v38 = vpop.eup %970  ;;  %v676_v39 = vadd.f32 1.0, %v969_v37 }
 0x44b   : > { %v973_v40 = vpop.eup %972  ;;  %v674_v41 = vadd.f32 1.0, %v971_v38 }
 0x44c   : > { %v975_v42 = vpop.eup %974  ;;  %976 = vrcp.f32 %v676_v39  ;;  %v677_v43 = vadd.f32 1.0, %v973_v40 }
 0x44d   : > { %978 = vrcp.f32 %v674_v41  ;;  %v675_v44 = vadd.f32 1.0, %v975_v42 }
 0x44e   : > { %980 = vrcp.f32 %v677_v43 }
 0x44f   : > { %982 = vrcp.f32 %v675_v44 }
 0x456   : > { %v977_v45 = vpop.eup %976 }
 0x457   : > { %v979_v46 = vpop.eup %978  ;;  %v692_v47 = vmul.f32 %v977_v45, %v1284_v3 }
 0x458   : > { %v981_v48 = vpop.eup %980  ;;  %v690_v49 = vmul.f32 %v979_v46, %v1280_v1 }
 0x459   : > { %v983_v50 = vpop.eup %982  ;;  %696 = vst [vmem:[%s1354_s15 + $0x10] sm:$0xff] %v692_v47  ;;  %v693_v51 = vmul.f32 %v981_v48, %v1288_v5 }
 0x45a   : > { %694 = vst [vmem:[%s1354_s15] sm:$0xff] %v690_v49  ;;  %v691_v3 = vmul.f32 %v983_v50, %v1282_v2 }
 0x45b   : > { %697 = vst [vmem:[%s1354_s15 + $0x18] sm:$0xff] %v693_v51 }
 0x45c   : > { %695 = vst [vmem:[%s1354_s15 + $0x8] sm:$0xff] %v691_v3 }
 0x45d   : > { %1053 = shalt.err (!%p1050_p11)
}
 0x45e   : > { %s1054_s26 = scalar_lea.hbm %s1378_s6, 1024  ;;  %s1058_s13 = scalar_lea.hbm %s1434_s5, 2048 }
 0x45f   : > { %p1055_p13 = scmp.ne.s32.totalorder %s1378_s6, %s1054_s26  ;;  %p1059_p6 = scmp.lt.u32.totalorder %s1378_s6, %s1434_s5 }
 0x460   : > { %p1060_p9 = scmp.lt.u32.totalorder %s1058_s13, %s1054_s26  ;;  %p1062_p12 = scmp.lt.u32.totalorder %s1054_s26, %s1378_s6 }
 0x461   : > { %p1056_p5 = pnand %p1055_p13, %p1447_p1 }
 0x462   : > { %p1061_p10 = por %p1060_p9, %p1059_p6 }
 0x463   : > { %p1057_p0 = pneg %p1056_p5 }
 0x464   : > { %p1063_p2 = por %p1062_p12, %p1061_p10 }
 0x466   : > { %p1064_p3 = pnand %p1063_p2, %p1057_p0 }
 0x468   : > { %1067 = shalt.err (!%p1064_p3)
}
 0x469   : > { %s1121_s15 = smov 128   ;;  %s1122_s16 = smov 8  }
 0x46a   : > { %886 = dma.vmem_to_hbm [thread:$0]  (%p1447_p1), %s1380_s17, 1024, %s1378_s6, %s1388_s22, %s1121_s15, %s1121_s15, %s1122_s16  }
 0x46b PF: > { %p903_p4 = scmp.ge.s32.totalorder %s1110_s21, 2  ;;  %s731_s7 = sand.u32 1, %s1098_s18  }
 0x46c   : > { %p1448_p7 = scmp.ne.s32.totalorder %s1439_s29, 0  ;;  %s732_s23 = scalar_lea.sflag [#allocation6], %s731_s7 }
 0x46e   : > { %p896_p8 = pnand %p903_p4, %p1448_p7 }
 0x470   : > { %1093 = dma.done.wait (!%p896_p8), %s732_s23, 1024  }
 0x471   : > { %1095 = vsyncadd (!%p896_p8), %s732_s23, 4294966272  ;;  %p17_p11 = scmp.ge.s32.totalorder %s1178_s24, 4   ;;  %s1449_s18 = smov %s1102_s19 }
 0x472   : > { %s1450_s19 = smov %s1106_s20  ;;  %s1451_s20 = smov %s1189_s27 }
 0x473   : > { %s1452_s21 = smov %s1178_s24  ;;  %19 = sbr.rel (!%p17_p11) target bundleno = 5 (0x5), region = 84 }
 0x47a   :  { %737 = vsyncpa [#allocation5], 1 }
 0x47b   :  { %739 = vsyncpa [#allocation5 + $0x1], 1 }
 0x47c   :  { %740 = vsyncpa [#allocation8], 1 }
 0x47d   :  { %741 = vsyncpa [#allocation6], 1 }
 0x47e   :  { %743 = vsyncpa [#allocation6 + $0x1], 1 }

</bundles_post_ra>
